<compile_context>
chip_gen: v7x
topology: tpu7x:2x2x1
jax: 0.10.0
libtpu: 0.0.40
codegen_flags: <defaults>
</compile_context>

<pallas_src>
import jax
import jax.numpy as jnp
from jax.experimental import pallas as pl
from jax.experimental.pallas import tpu as pltpu


def _afs_kernel(x_ref, w1_ref, b1_ref, w2_ref, b2_ref, o_ref):
    x = x_ref[...]                                            # (tb, D)
    xf = x if x.dtype == jnp.float32 else x.astype(jnp.float32)

    # fc1 + ReLU  (full-precision f32 accumulation on the MXU)
    h = jnp.dot(xf, w1_ref[...],
                preferred_element_type=jnp.float32,
                precision=jax.lax.Precision.HIGHEST) + b1_ref[...]
    h = jnp.maximum(h, 0.0)                                   # (tb, H)

    # fc2
    logits = jnp.dot(h, w2_ref[...],
                     preferred_element_type=jnp.float32,
                     precision=jax.lax.Precision.HIGHEST) + b2_ref[...]  # (tb, D)

    # numerically stable softmax over the feature (lane) dim — exact divide
    m = jnp.max(logits, axis=-1, keepdims=True)
    e = jnp.exp(logits - m)
    s = jnp.sum(e, axis=-1, keepdims=True)
    w = e / s

    o_ref[...] = (w * xf).astype(o_ref.dtype)


def adaptive_feature_selection(x, w1, b1, w2, b2, *, tb=512):
    """x: (B, D). Returns softmax(fc2(relu(fc1(x)))) * x, same dtype as x.

    Batch is tiled with tiles of up to `tb` rows (rounded to the sublane
    packing of x.dtype); ragged batches are zero-padded and sliced back.
    """
    B, D = x.shape
    H = w1.shape[1]

    # Sublane packing: 8 rows/vreg for 32-bit, 16 for bf16/f16.
    sub = 16 if jnp.dtype(x.dtype).itemsize == 2 else 8
    tb_eff = min(tb, ((B + sub - 1) // sub) * sub)
    tb_eff = max(sub, ((tb_eff + sub - 1) // sub) * sub)

    num_tiles = pl.cdiv(B, tb_eff)
    B_pad = num_tiles * tb_eff
    x_in = x if B_pad == B else jnp.pad(x, ((0, B_pad - B), (0, 0)))

    b1_2d = b1.reshape(1, H).astype(jnp.float32)
    b2_2d = b2.reshape(1, D).astype(jnp.float32)
    w1_f = w1.astype(jnp.float32)
    w2_f = w2.astype(jnp.float32)

    out = pl.pallas_call(
        _afs_kernel,
        out_shape=jax.ShapeDtypeStruct((B_pad, D), x.dtype),
        grid_spec=pltpu.PrefetchScalarGridSpec(
            num_scalar_prefetch=0,
            grid=(num_tiles,),
            in_specs=[
                pl.BlockSpec((tb_eff, D), lambda i: (i, 0)),   # x tile
                pl.BlockSpec((D, H), lambda i: (0, 0)),        # W1 (resident)
                pl.BlockSpec((1, H), lambda i: (0, 0)),        # b1
                pl.BlockSpec((H, D), lambda i: (0, 0)),        # W2 (resident)
                pl.BlockSpec((1, D), lambda i: (0, 0)),        # b2
            ],
            out_specs=pl.BlockSpec((tb_eff, D), lambda i: (i, 0)),
        ),
        compiler_params=pltpu.CompilerParams(
            dimension_semantics=("parallel",),   # v7x: shard batch across 2 TCs
        ),
    )(x_in, w1_f, b1_2d, w2_f, b2_2d)

    return out if B_pad == B else out[:B]

# TODO(synk): for much larger D (>= 2048) the full-weight residency should be
# replaced by a K-reduction grid axis + f32 accumulator to fit v7x's 64 MiB VMEM.


def _reference(x, w1, b1, w2, b2):
    h = jnp.maximum(
        jnp.dot(x, w1, precision=jax.lax.Precision.HIGHEST) + b1, 0.0)
    logits = jnp.dot(h, w2, precision=jax.lax.Precision.HIGHEST) + b2
    w = jax.nn.softmax(logits, axis=-1)
    return w * x


if __name__ == "__main__":
    # B is NOT a multiple of the tile, so the cdiv + padding path and a
    # multi-step "parallel" grid are both exercised.
    B, D = 200, 128          # input_dim = 128 -> hidden = 64
    H = D // 2

    key = jax.random.PRNGKey(0)
    kx, k1, k2, k3, k4 = jax.random.split(key, 5)

    # Deterministic parameter init (uniform, PyTorch-Linear-style scale).
    x  = jax.random.normal(kx, (B, D), dtype=jnp.float32)
    w1 = jax.random.uniform(k1, (D, H), minval=-1.0, maxval=1.0) / jnp.sqrt(D)
    b1 = jax.random.uniform(k2, (H,),  minval=-1.0, maxval=1.0) / jnp.sqrt(D)
    w2 = jax.random.uniform(k3, (H, D), minval=-1.0, maxval=1.0) / jnp.sqrt(H)
    b2 = jax.random.uniform(k4, (D,),  minval=-1.0, maxval=1.0) / jnp.sqrt(H)

    # tb=64 so the small test batch spans 4 grid steps (+ padding);
    # production callers keep the default tb=512.
    out = adaptive_feature_selection(x, w1, b1, w2, b2, tb=64)
    out = jax.block_until_ready(out)

    ref = _reference(x, w1, b1, w2, b2)
    assert out.shape == (B, D)
    assert jnp.allclose(out, ref, atol=1e-4, rtol=1e-4), "mismatch vs reference"

    print("KERNEL_OK")
</pallas_src>

<mosaic_0001>
module attributes {stable_mosaic.version = 11 : i64} {
  func.func @_afs_kernel(%arg0: i32, %arg1: memref<64x128xf32, #tpu.memory_space<vmem>>, %arg2: memref<128x64xf32, #tpu.memory_space<vmem>>, %arg3: memref<1x64xf32, #tpu.memory_space<vmem>>, %arg4: memref<64x128xf32, #tpu.memory_space<vmem>>, %arg5: memref<1x128xf32, #tpu.memory_space<vmem>>, %arg6: memref<64x128xf32, #tpu.memory_space<vmem>>) attributes {dimension_semantics = [#tpu.dimension_semantics<parallel>], iteration_bounds = array<i64: 4>, scalar_prefetch = 0 : i64, scratch_operands = 0 : i64, tpu.core_type = #tpu.core_type<tc>, window_params = [{transform_indices = @transform_0, window_bounds = array<i64: 64, 128>}, {pipeline_mode = #tpu.pipeline_mode<synchronous>, transform_indices = @transform_1, window_bounds = array<i64: 128, 64>}, {pipeline_mode = #tpu.pipeline_mode<synchronous>, transform_indices = @transform_2, window_bounds = array<i64: 1, 64>}, {pipeline_mode = #tpu.pipeline_mode<synchronous>, transform_indices = @transform_3, window_bounds = array<i64: 64, 128>}, {pipeline_mode = #tpu.pipeline_mode<synchronous>, transform_indices = @transform_4, window_bounds = array<i64: 1, 128>}, {transform_indices = @transform_5, window_bounds = array<i64: 64, 128>}]} {
    %c0 = arith.constant 0 : index
    %c0_0 = arith.constant 0 : index
    %0 = vector.load %arg1[%c0, %c0_0] : memref<64x128xf32, #tpu.memory_space<vmem>>, vector<64x128xf32>
    %c0_1 = arith.constant 0 : index
    %c0_2 = arith.constant 0 : index
    %1 = vector.load %arg2[%c0_1, %c0_2] : memref<128x64xf32, #tpu.memory_space<vmem>>, vector<128x64xf32>
    %cst = arith.constant dense<0.000000e+00> : vector<64x64xf32>
    %2 = tpu.matmul %0, %1, %cst {dimension_numbers = #tpu.dot_dimension_numbers<[1], [0], [0], [1], [0, 0, 1, 1], [], []>, precision = #tpu.contract_precision<fp32>} : vector<64x128xf32>, vector<128x64xf32>, vector<64x64xf32> -> vector<64x64xf32>
    %c0_3 = arith.constant 0 : index
    %c0_4 = arith.constant 0 : index
    %3 = vector.load %arg3[%c0_3, %c0_4] : memref<1x64xf32, #tpu.memory_space<vmem>>, vector<1x64xf32>
    %4 = vector.broadcast %3 : vector<1x64xf32> to vector<64x64xf32>
    %5 = arith.addf %2, %4 : vector<64x64xf32>
    %cst_5 = arith.constant 0.000000e+00 : f32
    %6 = vector.broadcast %cst_5 : f32 to vector<64x64xf32>
    %7 = arith.maximumf %5, %6 : vector<64x64xf32>
    %c0_6 = arith.constant 0 : index
    %c0_7 = arith.constant 0 : index
    %8 = vector.load %arg4[%c0_6, %c0_7] : memref<64x128xf32, #tpu.memory_space<vmem>>, vector<64x128xf32>
    %cst_8 = arith.constant dense<0.000000e+00> : vector<64x128xf32>
    %9 = tpu.matmul %7, %8, %cst_8 {dimension_numbers = #tpu.dot_dimension_numbers<[1], [0], [0], [1], [0, 0, 1, 1], [], []>, precision = #tpu.contract_precision<fp32>} : vector<64x64xf32>, vector<64x128xf32>, vector<64x128xf32> -> vector<64x128xf32>
    %c0_9 = arith.constant 0 : index
    %c0_10 = arith.constant 0 : index
    %10 = vector.load %arg5[%c0_9, %c0_10] : memref<1x128xf32, #tpu.memory_space<vmem>>, vector<1x128xf32>
    %11 = vector.broadcast %10 : vector<1x128xf32> to vector<64x128xf32>
    %12 = arith.addf %9, %11 : vector<64x128xf32>
    %cst_11 = arith.constant dense<0xFF800000> : vector<64xf32>
    %13 = vector.multi_reduction <maximumf>, %12, %cst_11 [1] : vector<64x128xf32> to vector<64xf32>
    %14 = vector.shape_cast %13 : vector<64xf32> to vector<64x1xf32>
    %15 = vector.broadcast %14 : vector<64x1xf32> to vector<64x128xf32>
    %16 = arith.subf %12, %15 : vector<64x128xf32>
    %17 = math.exp %16 : vector<64x128xf32>
    %cst_12 = arith.constant dense<0.000000e+00> : vector<64xf32>
    %18 = vector.multi_reduction <add>, %17, %cst_12 [1] : vector<64x128xf32> to vector<64xf32>
    %19 = vector.shape_cast %18 : vector<64xf32> to vector<64x1xf32>
    %20 = vector.broadcast %19 : vector<64x1xf32> to vector<64x128xf32>
    %21 = arith.divf %17, %20 : vector<64x128xf32>
    %22 = arith.mulf %21, %0 : vector<64x128xf32>
    %c0_13 = arith.constant 0 : index
    %c0_14 = arith.constant 0 : index
    %23 = vector.load %arg6[%c0_13, %c0_14] : memref<64x128xf32, #tpu.memory_space<vmem>>, vector<64x128xf32>
    tpu.vector_store %arg6[%c0_13, %c0_14], %22 {strides = array<i32>} : memref<64x128xf32, #tpu.memory_space<vmem>>, vector<64x128xf32>,
    return
  }
  func.func @transform_0(%arg0: i32) -> (i32, i32) {
    %c0_i32 = arith.constant 0 : i32
    %c0_i32_0 = arith.constant 0 : i32
    return %arg0, %c0_i32 : i32, i32
  }
  func.func @transform_1(%arg0: i32) -> (i32, i32) {
    %c0_i32 = arith.constant 0 : i32
    %c0_i32_0 = arith.constant 0 : i32
    %c0_i32_1 = arith.constant 0 : i32
    return %c0_i32, %c0_i32_0 : i32, i32
  }
  func.func @transform_2(%arg0: i32) -> (i32, i32) {
    %c0_i32 = arith.constant 0 : i32
    %c0_i32_0 = arith.constant 0 : i32
    %c0_i32_1 = arith.constant 0 : i32
    return %c0_i32, %c0_i32_0 : i32, i32
  }
  func.func @transform_3(%arg0: i32) -> (i32, i32) {
    %c0_i32 = arith.constant 0 : i32
    %c0_i32_0 = arith.constant 0 : i32
    %c0_i32_1 = arith.constant 0 : i32
    return %c0_i32, %c0_i32_0 : i32, i32
  }
  func.func @transform_4(%arg0: i32) -> (i32, i32) {
    %c0_i32 = arith.constant 0 : i32
    %c0_i32_0 = arith.constant 0 : i32
    %c0_i32_1 = arith.constant 0 : i32
    return %c0_i32, %c0_i32_0 : i32, i32
  }
  func.func @transform_5(%arg0: i32) -> (i32, i32) {
    %c0_i32 = arith.constant 0 : i32
    %c0_i32_0 = arith.constant 0 : i32
    return %arg0, %c0_i32 : i32, i32
  }
}

</mosaic_0001>

<bundles_post_ra>
// kernel: tpu_custom_call.1
= control target key start
LH: loop header
LB: loop body
LE: loop exit
PB: predicated region body
PF: predicated region fallthrough
CT: control target
= control target key end

     0   :  { %10 = vsyncpa [#allocation3], 0  ;;  %s4416_s0 = inlined_call_operand.hbm [shape: f32[256,128], index: 0, kind: input, shape index: {}]   ;;  %s4417_s1 = inlined_call_operand.vmem [shape: f32[128,64], index: 1, kind: input, shape index: {}]   ;;  %s4418_s2 = inlined_call_operand.vmem [shape: f32[1,64], index: 2, kind: input, shape index: {}]   ;;  %s4419_s3 = inlined_call_operand.vmem [shape: f32[64,128], index: 3, kind: input, shape index: {}]   ;;  %s4420_s4 = inlined_call_operand.vmem [shape: f32[1,128], index: 4, kind: input, shape index: {}]   ;;  %s4421_s5 = inlined_call_operand.hbm [shape: f32[256,128], index: 5, kind: output, shape index: {}]  }
   0x1   :  { %12 = vsyncpa [#allocation3 + $0x1], 0 }
   0x2   :  { %13 = vsyncpa [#allocation4], 0 }
   0x3   :  { %15 = vsyncpa [#allocation4 + $0x1], 0  ;;  %s3577_s18 = smov 0   ;;  %s3579_s19 = smov 0  }
   0x4   :  { %s3581_s20 = smov 0   ;;  %s3583_s21 = smov 0  }
   0x5 LB: > { %s3598_s22 = sadd.s32 4294967295, %s3539_s21   ;;  %s2279_s23 = sadd.s32 4294967294, %s3539_s21   ;;  %s3539_s21 = sphi %s3583_s21, %s4433_s21   ;;  %s3535_s20 = sphi %s3581_s20, %s4432_s20   ;;  %s3531_s19 = sphi %s3579_s19, %s4431_s19   ;;  %s3527_s18 = sphi %s3577_s18, %s4430_s18  }
   0x6   : > { %s3602_s24 = sadd.s32 1, %s3539_s21   ;;  %s28_s25 = sadd.s32 1, %s3535_s20 }
   0x7   : > { %s25_s26 = ssub.s32 %s3539_s21, %s3602_s24  ;;  %p35_p0 = scmp.ne.s32.totalorder %s3535_s20, %s3531_s19 }
   0x8   : > { %p26_p1 = scmp.eq.s32.totalorder %s25_s26, 0  ;;  %p36_p2 = scmp.eq.s32.totalorder %s3539_s21, 0 }
   0x9   : > { %p41_p3 = scmp.ne.s32.totalorder %s3531_s19, %s3527_s18  ;;  %p42_p4 = scmp.eq.s32.totalorder %s3598_s22, 0 }
   0xa   : > { %s3614_s27 = scalar_select %p26_p1, %s3535_s20, %s28_s25  }
   0xb   : > { %p3616_p5 = por %p36_p2, %p35_p0  ;;  %p3620_p6 = por %p42_p4, %p41_p3 }
   0xc   : > { %p149_p7 = scmp.eq.s32.totalorder %s3598_s22, 3  ;;  %p155_p8 = scmp.eq.s32.totalorder %s2279_s23, 3 }
   0xd   : > { %p3365_p9 = scmp.lt.s32.totalorder %s3539_s21, 4  ;;  %s187_s7 = sand.u32 1, %s3535_s20  }
   0xe   : > { %p3626_p10 = por %p149_p7, %p35_p0  ;;  %p3630_p11 = por %p155_p8, %p41_p3 }
   0xf   : > { %s2295_s8 = sshll.u32 %s3539_s21, 10  ;;  %s2282_s9 = sshll.u32 %s187_s7, 6 }
  0x10   : > { %s4425_s30 = scalar_select %p3626_p10, 1, 0 }
  0x11   : > { %s4426_s6 = scalar_select %p3630_p11, 1, 0 }
  0x12   : > { %s3639_s12 = scalar_lea.hbm %s4416_s0, %s2295_s8  ;;  %s191_s13 = scalar_lea.vmem [#allocation2], %s2282_s9 }
  0x13   : > { %s198_s14 = sshll.u32 %s191_s13, 4  ;;  %p3643_p12 = pnand %p3365_p9, %p3616_p5  ;;  %s3647_s14 = int_to_ptr.vmem [resolvable:$true] %s198_s14 }
  0x14   : > { %s3649_s16 = scalar_lea.sflag [#allocation3], %s187_s7  ;;  %s3443_s17 = scalar_lea.hbm %s3639_s12, 1024 }
  0x15   : > { %p3444_p13 = scmp.ne.s32.totalorder %s3639_s12, %s3443_s17  ;;  %p3445_p0 = pneg %p3643_p12 }
  0x16   : > { %s3448_s26 = scalar_lea.hbm %s4416_s0, 4096  ;;  %p3449_p3 = scmp.lt.u32.totalorder %s3639_s12, %s4416_s0 }
  0x17   : > { %p3446_p1 = pnand %p3445_p0, %p3444_p13  ;;  %p3450_p4 = scmp.lt.u32.totalorder %s3448_s26, %s3443_s17 }
  0x18   : > { %p3452_p7 = scmp.lt.u32.totalorder %s3443_s17, %s3639_s12 }
  0x19   : > { %p3447_p2 = pneg %p3446_p1  ;;  %p3451_p5 = por %p3450_p4, %p3449_p3 }
  0x1b   : > { %p3453_p8 = por %p3452_p7, %p3451_p5 }
  0x1d   : > { %p3454_p9 = pnand %p3453_p8, %p3447_p2 }
  0x1f   : > { %3457 = shalt.err (!%p3454_p9)
}
  0x20   : > { %s3458_s7 = scalar_lea.vmem %s3647_s14, 1024  ;;  %s3541_s9 = smov [#allocation2]  }
  0x21   : > { %p3459_p13 = scmp.ne.s32.totalorder %s3647_s14, %s3458_s7  ;;  %s3463_s10 = sshll.u32 %s3541_s9, 4  ;;  %s3464_s10 = int_to_ptr.vmem [resolvable:$false] %s3463_s10 }
  0x22   : > { %s3465_s11 = scalar_lea.vmem %s3464_s10, 2048  ;;  %p3466_p10 = scmp.lt.s32.totalorder %s3647_s14, %s3464_s10 }
  0x23   : > { %p3461_p1 = pnand %p3459_p13, %p3445_p0  ;;  %p3467_p3 = scmp.lt.s32.totalorder %s3465_s11, %s3458_s7 }
  0x25   : > { %p3462_p11 = pneg %p3461_p1  ;;  %p3468_p4 = por %p3467_p3, %p3466_p10 }
  0x27   : > { %p3469_p5 = pnand %p3468_p4, %p3462_p11 }
  0x29   : > { %3472 = shalt.err (!%p3469_p5)
}
  0x2a   : > { %s3542_s13 = smov 128   ;;  %s3543_s17 = smov 8  }
  0x2b   : > { %3360 = dma.hbm_to_vmem [thread:$0]  (!%p3643_p12), %s3639_s12, 1024, %s3647_s14, %s3649_s16, %s3542_s13, %s3542_s13, %s3543_s17  }
  0x2c   : > { %p2285_p0 = scmp.ge.s32.totalorder %s3539_s21, 1  ;;  %p206_p2 = scmp.lt.s32.totalorder %s3539_s21, 5 }
  0x2e   : > { %p207_p7 = pnand %p2285_p0, %p206_p2 }
  0x2f   : > { %s3680_s23 = sand.u32 (!%p207_p7), 1, %s3531_s19  }
  0x30   : > { %210 = sbr.rel (%p207_p7) target bundleno = 1098 (0x44a), region = 40  ;;  %s2286_s25 = sshll.u32 (!%p207_p7), %s3680_s23, 6 }
  0x31   : > { %s213_s26 = scalar_lea.sflag (!%p207_p7), [#allocation3], %s3680_s23  ;;  %s3686_s28 = scalar_lea.vmem (!%p207_p7), [#allocation2], %s2286_s25 }
  0x37   : > { %3518 = dma.done.wait (%p3620_p6), %s213_s26, 1024  }
  0x38   : > { %3520 = vsyncadd (%p3620_p6), %s213_s26, 4294966272  ;;  %v253_v0 = vld [vmem:[%s4417_s1] sm:$0xff]  ;;  %v254_v1 = vld [vmem:[%s4417_s1 + $0x8] sm:$0xff]  ;;  %vm1241_vm0 = vcmask 523264   ;;  %s4349_s12 = scalar_lea.vmem [#allocation5], %s2286_s25  ;;  %s2296_s25 = sshll.u32 %s3598_s22, 10 }
  0x39   : > { %v255_v2 = vld [vmem:[%s4417_s1 + $0x10] sm:$0xff]  ;;  %v277_v3 = vand.u32 4294901760, %v253_v0  ;;  %v280_v4 = vand.u32 4294901760, %v254_v1  ;;  %v256_v5 = vld [vmem:[%s4417_s1 + $0x18] sm:$0xff]  ;;  %v257_v7 = vld [vmem:[%s4417_s1 + $0x20] sm:$0xff]  ;;  %s2206_s14 = sshll.u32 %s4349_s12, 4  ;;  %s4368_s8 = scalar_lea.hbm %s4421_s5, %s2296_s25  ;;  %s4370_s14 = int_to_ptr.vmem [resolvable:$true] %s2206_s14 }
  0x3a   : > { %v283_v6 = vand.u32 4294901760, %v255_v2  ;;  %v258_v8 = vld [vmem:[%s4417_s1 + $0x28] sm:$0xff]  ;;  %v286_v9 = vand.u32 4294901760, %v256_v5  ;;  %v289_v10 = vand.u32 4294901760, %v257_v7  ;;  %v259_v16 = vld [vmem:[%s4417_s1 + $0x30] sm:$0xff]  ;;  %v260_v17 = vld [vmem:[%s4417_s1 + $0x38] sm:$0xff] }
  0x3b   : > { %v292_v11 = vand.u32 4294901760, %v258_v8  ;;  %v3710_v12 = vpack.c.bf16 %v280_v4, %v277_v3  ;;  %v3712_v13 = vsub.f32 %v253_v0, %v277_v3  ;;  %v3714_v14 = vsub.f32 %v254_v1, %v280_v4  ;;  %v261_v37 = vld [vmem:[%s4417_s1 + $0x40] sm:$0xff]  ;;  %v262_v38 = vld [vmem:[%s4417_s1 + $0x48] sm:$0xff]  ;;  %v3772_v43 = vld [vmem:[%s4417_s1 + $0x50] sm:$0xff]  ;;  %s2193_s22 = scalar_lea.sflag [#allocation4], %s3680_s23  ;;  %s3473_s7 = scalar_lea.vmem %s4370_s14, 1024 }
  0x3c   : > { %v3716_v15 = vsub.f32 %v255_v2, %v283_v6  ;;  %v3724_v18 = vpack.c.bf16 %v286_v9, %v283_v6  ;;  %v3726_v19 = vsub.f32 %v256_v5, %v286_v9  ;;  %v3728_v20 = vsub.f32 %v257_v7, %v289_v10  ;;  %v264_v52 = vld [vmem:[%s4417_s1 + $0x58] sm:$0xff]  ;;  %v265_v57 = vld [vmem:[%s4417_s1 + $0x60] sm:$0xff]  ;;  %v266_v58 = vld [vmem:[%s4417_s1 + $0x68] sm:$0xff]  ;;  %p3474_p6 = scmp.ne.s32.totalorder %s4370_s14, %s3473_s7  ;;  %p4428_p10 = scmp.ne.s32.totalorder %s4425_s30, 0 }
  0x3d   : > { %v440_v21 = vand.u32 4294901760, %v3712_v13  ;;  %v447_v22 = vand.u32 4294901760, %v3714_v14  ;;  %v3733_v24 = vsub.f32 %v258_v8, %v292_v11  ;;  %2970 = vmatprep.subr.bf16.mxu1 %v3710_v12  ;;  %v295_v27 = vand.u32 4294901760, %v259_v16  ;;  %s3544_s9 = smov [#allocation5]  }
  0x3e   : > { %v454_v23 = vand.u32 4294901760, %v3716_v15  ;;  %v461_v25 = vand.u32 4294901760, %v3726_v19  ;;  %v468_v26 = vand.u32 4294901760, %v3728_v20  ;;  %v298_v28 = vand.u32 4294901760, %v260_v17  ;;  %2972 = vmatpush3.bf16.msra.mxu1 %v3710_v12  ;;  %p3475_p11 = pnand %p3474_p6, %p4428_p10  ;;  %s3477_s10 = sshll.u32 %s3544_s9, 4  ;;  %s3478_s10 = int_to_ptr.vmem [resolvable:$false] %s3477_s10 }
  0x3f   : > { %v441_v29 = vsub.f32 %v3712_v13, %v440_v21  ;;  %v448_v30 = vsub.f32 %v3714_v14, %v447_v22  ;;  %v475_v32 = vand.u32 4294901760, %v3733_v24  ;;  %2974 = vmatprep.subr.bf16.mxu1 %v3724_v18  ;;  %v3753_v34 = vpack.c.bf16 %v292_v11, %v289_v10  ;;  %v267_v10 = vld [vmem:[%s4417_s1 + $0x70] sm:$0xff]  ;;  %s3479_s29 = scalar_lea.vmem %s3478_s10, 2048  ;;  %p3480_p8 = scmp.lt.s32.totalorder %s4370_s14, %s3478_s10 }
  0x40   : > { %v455_v31 = vsub.f32 %v3716_v15, %v454_v23  ;;  %v462_v33 = vsub.f32 %v3726_v19, %v461_v25  ;;  %v469_v35 = vsub.f32 %v3728_v20, %v468_v26  ;;  %v3758_v36 = vsub.f32 %v259_v16, %v295_v27  ;;  %p3476_p12 = pneg %p3475_p11  ;;  %p3481_p9 = scmp.lt.s32.totalorder %s3479_s29, %s3473_s7 }
  0x41   : > { %v442_v39 = vand.u32 4294901760, %v441_v29  ;;  %v449_v40 = vand.u32 4294901760, %v448_v30  ;;  %v476_v42 = vsub.f32 %v3733_v24, %v475_v32  ;;  %v3775_v47 = vsub.f32 %v260_v17, %v298_v28 }
  0x42   : > { %v456_v41 = vand.u32 4294901760, %v455_v31  ;;  %v463_v44 = vand.u32 4294901760, %v462_v33  ;;  %v470_v45 = vand.u32 4294901760, %v469_v35  ;;  %v482_v46 = vand.u32 4294901760, %v3758_v36  ;;  %2976 = vmatpush3.bf16.msra.mxu1 %v3724_v18  ;;  %v245_v35 = vld [vmem:[%s3686_s28] sm:$0xff]  ;;  %p3482_p13 = por %p3481_p9, %p3480_p8 }
  0x43   : > { %v3001_v48 = vpack.c.bf16 %v449_v40, %v442_v39  ;;  %v477_v49 = vand.u32 4294901760, %v476_v42  ;;  %v301_v50 = vand.u32 4294901760, %v261_v37  ;;  %v304_v51 = vand.u32 4294901760, %v262_v38  ;;  %2978 = vmatprep.subr.bf16.mxu1 %v3753_v34 }
  0x44   : > { %v3005_v53 = vpack.c.bf16 %v463_v44, %v456_v41  ;;  %v483_v54 = vsub.f32 %v3758_v36, %v482_v46  ;;  %v489_v55 = vand.u32 4294901760, %v3775_v47  ;;  %v307_v56 = vand.u32 4294901760, %v3772_v43  ;;  %p3483_p1 = pnand %p3482_p13, %p3476_p12 }
  0x45   : > { %3002 = vmatprep.subr.bf16.mxu0 %v3001_v48  ;;  %v3009_v59 = vpack.c.bf16 %v477_v49, %v470_v45  ;;  %v3793_v60 = vpack.c.bf16 %v298_v28, %v295_v27  ;;  %v3795_v61 = vsub.f32 %v261_v37, %v301_v50  ;;  %v3797_v62 = vsub.f32 %v262_v38, %v304_v51  ;;  %v268_v28 = vld [vmem:[%s4417_s1 + $0x78] sm:$0xff] }
  0x46   : > { %3004 = vmatpush3.bf16.msra.mxu0 %v3001_v48  ;;  %v484_v63 = vand.u32 4294901760, %v483_v54  ;;  %v490_v0 = vsub.f32 %v3775_v47, %v489_v55  ;;  %v310_v1 = vand.u32 4294901760, %v264_v52  ;;  %v3803_v2 = vsub.f32 %v3772_v43, %v307_v56  ;;  %2980 = vmatpush3.bf16.msra.mxu1 %v3753_v34 }
  0x47   : > { %3006 = vmatprep.subr.bf16.mxu0 %v3005_v53  ;;  %v496_v3 = vand.u32 4294901760, %v3795_v61  ;;  %v503_v4 = vand.u32 4294901760, %v3797_v62  ;;  %v313_v5 = vand.u32 4294901760, %v265_v57  ;;  %v316_v6 = vand.u32 4294901760, %v266_v58  ;;  %2982 = vmatprep.subr.bf16.mxu1 %v3793_v60 }
  0x48   : > { %v491_v7 = vand.u32 4294901760, %v490_v0  ;;  %v510_v8 = vand.u32 4294901760, %v3803_v2  ;;  %v3810_v9 = vsub.f32 %v264_v52, %v310_v1  ;;  %v3815_v11 = vpack.c.bf16 %v304_v51, %v301_v50 }
  0x49   : > { %v497_v16 = vsub.f32 %v3795_v61, %v496_v3  ;;  %v504_v17 = vsub.f32 %v3797_v62, %v503_v4  ;;  %v3823_v27 = vsub.f32 %v265_v57, %v313_v5  ;;  %v3832_v33 = vsub.f32 %v266_v58, %v316_v6 }
  0x4a   : > { %3008 = vmatpush3.bf16.msra.mxu0 %v3005_v53  ;;  %v3013_v29 = vpack.c.bf16 %v491_v7, %v484_v63  ;;  %v511_v30 = vsub.f32 %v3803_v2, %v510_v8  ;;  %v517_v31 = vand.u32 4294901760, %v3810_v9  ;;  %2984 = vmatpush3.bf16.msra.mxu1 %v3793_v60  ;;  %v319_v40 = vand.u32 4294901760, %v267_v10 }
  0x4b   : > { %3010 = vmatprep.subr.bf16.mxu0 %v3009_v59  ;;  %v498_v37 = vand.u32 4294901760, %v497_v16  ;;  %v505_v38 = vand.u32 4294901760, %v504_v17  ;;  %v524_v39 = vand.u32 4294901760, %v3823_v27  ;;  %2986 = vmatprep.subr.bf16.mxu1 %v3815_v11  ;;  %v531_v42 = vand.u32 4294901760, %v3832_v33 }
  0x4c   : > { %v518_v41 = vsub.f32 %v3810_v9, %v517_v31  ;;  %v322_v43 = vand.u32 4294901760, %v268_v28  ;;  %v3840_v44 = vsub.f32 %v267_v10, %v319_v40  ;;  %v3842_v45 = vand.u32 4294901760, %v245_v35  ;;  %v246_v10 = vld [vmem:[%s3686_s28 + $0x8] sm:$0xff] }
  0x4d   : > { %v3844_v48 = vpack.c.bf16 %v310_v1, %v307_v56  ;;  %v512_v49 = vand.u32 4294901760, %v511_v30  ;;  %v525_v50 = vsub.f32 %v3823_v27, %v524_v39  ;;  %v3017_v52 = vpack.c.bf16 %v505_v38, %v498_v37  ;;  %v247_v30 = vld [vmem:[%s3686_s28 + $0x10] sm:$0xff] }
  0x4e   : > { %3012 = vmatpush3.bf16.msra.mxu0 %v3009_v59  ;;  %v3847_v51 = vsub.f32 %v268_v28, %v322_v43  ;;  %2988 = vmatpush3.bf16.msra.mxu1 %v3815_v11  ;;  %v519_v53 = vand.u32 4294901760, %v518_v41  ;;  %v532_v54 = vsub.f32 %v3832_v33, %v531_v42  ;;  %v538_v57 = vand.u32 4294901760, %v3840_v44 }
  0x4f   : > { %3014 = vmatprep.subr.bf16.mxu0 %v3013_v29  ;;  %2613 = vmatprep.mubr.f32.mxu0 %v3842_v45  ;;  %v3855_v58 = vpack.c.bf16 %v316_v6, %v313_v5  ;;  %v526_v59 = vand.u32 4294901760, %v525_v50  ;;  %v3862_v16 = vpack.c.bf16 %v322_v43, %v319_v40  ;;  %v3868_v28 = vpack.c.bf16 %v447_v22, %v440_v21  ;;  %v248_v22 = vld [vmem:[%s3686_s28 + $0x18] sm:$0xff] }
  0x50   : > { %v545_v56 = vand.u32 4294901760, %v3847_v51  ;;  %2990 = vmatprep.subr.bf16.mxu1 %v3844_v48  ;;  %v3021_v63 = vpack.c.bf16 %v519_v53, %v512_v49  ;;  %v533_v0 = vand.u32 4294901760, %v532_v54  ;;  %v539_v1 = vsub.f32 %v3840_v44, %v538_v57 }
  0x51   : > { %v3878_v37 = vpack.c.bf16 %v461_v25, %v454_v23  ;;  %v3884_v38 = vpack.c.bf16 %v475_v32, %v468_v26  ;;  %v3890_v21 = vpack.c.bf16 %v489_v55, %v482_v46  ;;  %v3895_v23 = vsub.f32 %v245_v35, %v3842_v45 }
  0x52   : > { %3016 = vmatpush3.bf16.msra.mxu0 %v3013_v29  ;;  %2992 = vmatpush3.bf16.msra.mxu1 %v3844_v48  ;;  %v546_v7 = vsub.f32 %v3847_v51, %v545_v56  ;;  %v3025_v5 = vpack.c.bf16 %v533_v0, %v526_v59  ;;  %v540_v6 = vand.u32 4294901760, %v539_v1  ;;  %v3871_v29 = vand.u32 4294901760, %v246_v10  ;;  %v252_v0 = vld [vmem:[%s3686_s28 + $0x38] sm:$0xff] }
  0x53   : > { %3018 = vmatprep.subr.bf16.mxu0 %v3017_v52  ;;  %2994 = vmatprep.subr.bf16.mxu1 %v3855_v58  ;;  %v3901_v25 = vpack.c.bf16 %v503_v4, %v496_v3  ;;  %v3905_v26 = vpack.c.bf16 %v517_v31, %v510_v8  ;;  %v3910_v46 = vpack.c.bf16 %v531_v42, %v524_v39  ;;  %v3912_v35 = vand.u32 4294901760, %v247_v30  ;;  %v249_v4 = vld [vmem:[%s3686_s28 + $0x20] sm:$0xff]  ;;  %v250_v31 = vld [vmem:[%s3686_s28 + $0x28] sm:$0xff] }
  0x54   : > { %v547_v17 = vand.u32 4294901760, %v546_v7  ;;  %v3908_v32 = vsub.f32 %v246_v10, %v3871_v29  ;;  %v359_v40 = vand.u32 4294901760, %v3895_v23  ;;  %v3915_v41 = vpack.c.bf16 %v545_v56, %v538_v57  ;;  %v251_v56 = vld [vmem:[%s3686_s28 + $0x30] sm:$0xff] }
  0x55   : > { %v3918_v3 = vand.u32 4294901760, %v248_v22  ;;  %v3924_v39 = vsub.f32 %v247_v30, %v3912_v35  ;;  %v3033_v50 = vpack.c.bf16 %v3714_v14, %v3712_v13  ;;  %v3940_v57 = vand.u32 4294901760, %v250_v31 }
  0x56   : > { %3020 = vmatpush3.bf16.msra.mxu0 %v3017_v52  ;;  %2996 = vmatpush3.bf16.msra.mxu1 %v3855_v58  ;;  %v3029_v55 = vpack.c.bf16 %v547_v17, %v540_v6  ;;  %v369_v8 = vand.u32 4294901760, %v3908_v32  ;;  %v360_v42 = vsub.f32 %v3895_v23, %v359_v40  ;;  %v3937_v52 = vand.u32 4294901760, %v249_v4 }
  0x57   : > { %3022 = vmatprep.subr.bf16.mxu0 %v3021_v63  ;;  %2998 = vmatprep.subr.bf16.mxu1 %v3862_v16  ;;  %v3930_v43 = vsub.f32 %v248_v22, %v3918_v3  ;;  %v379_v53 = vand.u32 4294901760, %v3924_v39  ;;  %v3952_v14 = vsub.f32 %v250_v31, %v3940_v57  ;;  %v3037_v10 = vpack.c.bf16 %v3726_v19, %v3716_v15 }
  0x58   : > { %v370_v49 = vsub.f32 %v3908_v32, %v369_v8  ;;  %v361_v54 = vand.u32 4294901760, %v360_v42  ;;  %v3946_v1 = vsub.f32 %v249_v4, %v3937_v52  ;;  %v3962_v30 = vand.u32 4294901760, %v252_v0 }
  0x59   : > { %v389_v59 = vand.u32 4294901760, %v3930_v43  ;;  %v380_v13 = vsub.f32 %v3924_v39, %v379_v53  ;;  %v409_v22 = vand.u32 4294901760, %v3952_v14  ;;  %v3041_v42 = vpack.c.bf16 %v3733_v24, %v3728_v20 }
  0x5a   : > { %3024 = vmatpush3.bf16.msra.mxu0 %v3021_v63  ;;  %3000 = vmatpush3.bf16.msra.mxu1 %v3862_v16  ;;  %v371_v63 = vand.u32 4294901760, %v370_v49  ;;  %v399_v6 = vand.u32 4294901760, %v3946_v1  ;;  %v3974_v19 = vsub.f32 %v252_v0, %v3962_v30  ;;  %v3045_v24 = vpack.c.bf16 %v3775_v47, %v3758_v36 }
  0x5b   : > { %3026 = vmatprep.subr.bf16.mxu0 %v3025_v5  ;;  %2569 = vmatprep.mubr.f32.mxu1 %v361_v54  ;;  %v390_v7 = vsub.f32 %v3930_v43, %v389_v59  ;;  %v381_v17 = vand.u32 4294901760, %v380_v13  ;;  %v410_v31 = vsub.f32 %v3952_v14, %v409_v22  ;;  %v3053_v36 = vpack.c.bf16 %v3810_v9, %v3803_v2 }
  0x5c   : > { %v400_v15 = vsub.f32 %v3946_v1, %v399_v6  ;;  %v3057_v47 = vpack.c.bf16 %v3832_v33, %v3823_v27  ;;  %v1229_v27 = vld [vmem:[%s4419_s3 + $0x18] sm:$0xff] }
  0x5d   : > { %2570 = vmatmul.mubr.f32.vlgmr.msra.gmra.mrb[0].mxu1 %v371_v63 }
  0x5e   : > { %3028 = vmatpush3.bf16.msra.mxu0 %v3025_v5  ;;  %v3959_v5 = vand.u32 4294901760, %v251_v56  ;;  %2572 = vmatprep.mubr.f32.mxu1 %v381_v17  ;;  %v401_v54 = vand.u32 4294901760, %v400_v15 }
  0x5f   : > { %3030 = vmatprep.subr.bf16.mxu0 %v3029_v55 }
  0x60   : > { %v3967_v4 = vsub.f32 %v251_v56, %v3959_v5  ;;  %v429_v56 = vand.u32 4294901760, %v3974_v19 }
  0x62   : > { %3032 = vmatpush3.bf16.msra.mxu0 %v3029_v55  ;;  %v391_v55 = vand.u32 4294901760, %v390_v7  ;;  %v419_v49 = vand.u32 4294901760, %v3967_v4  ;;  %v430_v20 = vsub.f32 %v3974_v19, %v429_v56  ;;  %v3049_v7 = vpack.c.bf16 %v3797_v62, %v3795_v61 }
  0x63   : > { %3034 = vmatprep.subr.bf16.mxu0 %v3033_v50  ;;  %v3061_v61 = vpack.c.bf16 %v3847_v51, %v3840_v44 }
  0x64   : > { %2573 = vmatmul.mubr.f32.gmra.mrb[2].mxu1 %v391_v55  ;;  %v420_v63 = vsub.f32 %v3967_v4, %v419_v49  ;;  %v431_v13 = vand.u32 4294901760, %v430_v20 }
  0x65   : > { %2614 = vmatmul.mubr.f32.vlgmr.msra.gmra.mrb[0].mxu0 %v3871_v29  ;;  %2575 = vmatprep.mubr.f32.mxu1 %v401_v54 }
  0x66   : > { %3036 = vmatpush3.bf16.msra.mxu0 %v3033_v50  ;;  %2616 = vmatprep.mubr.f32.mxu0 %v3912_v35  ;;  %v411_v50 = vand.u32 4294901760, %v410_v31  ;;  %v421_v0 = vand.u32 4294901760, %v420_v63 }
  0x67   : > { %3038 = vmatprep.subr.bf16.mxu0 %v3037_v10 }
  0x68   : > { %2576 = vmatmul.mubr.f32.gmra.mrb[4].mxu1 %v411_v50 }
  0x69   : > { %2617 = vmatmul.mubr.f32.gmra.mrb[2].mxu0 %v3918_v3  ;;  %2578 = vmatprep.mubr.f32.mxu1 %v421_v0 }
  0x6a   : > { %3040 = vmatpush3.bf16.msra.mxu0 %v3037_v10  ;;  %2619 = vmatprep.mubr.f32.mxu0 %v3937_v52 }
  0x6b   : > { %3042 = vmatprep.subr.bf16.mxu0 %v3041_v42 }
  0x6c   : > { %2579 = vmatmul.mubr.f32.gmra.mrb[6].mxu1 %v431_v13 }
  0x6d   : > { %2620 = vmatmul.mubr.f32.gmra.mrb[4].mxu0 %v3940_v57 }
  0x6e   : > { %3044 = vmatpush3.bf16.msra.mxu0 %v3041_v42  ;;  %2622 = vmatprep.mubr.f32.mxu0 %v3959_v5 }
  0x6f   : > { %3046 = vmatprep.subr.bf16.mxu0 %v3045_v24 }
  0x71   : > { %2623 = vmatmul.mubr.f32.gmra.mrb[6].mxu0 %v3962_v30 }
  0x72   : > { %3048 = vmatpush3.bf16.msra.mxu0 %v3045_v24  ;;  %2657 = vmatprep.mubr.f32.mxu0 %v3895_v23 }
  0x73   : > { %3050 = vmatprep.subr.bf16.mxu0 %v3049_v7 }
  0x76   : > { %3052 = vmatpush3.bf16.msra.mxu0 %v3049_v7 }
  0x77   : > { %3054 = vmatprep.subr.bf16.mxu0 %v3053_v36 }
  0x7a   : > { %3056 = vmatpush3.bf16.msra.mxu0 %v3053_v36 }
  0x7b   : > { %3058 = vmatprep.subr.bf16.mxu0 %v3057_v47 }
  0x7e   : > { %3060 = vmatpush3.bf16.msra.mxu0 %v3057_v47 }
  0x7f   : > { %3062 = vmatprep.subr.bf16.mxu0 %v3061_v61 }
  0x82   : > { %3064 = vmatpush3.bf16.msra.mxu0 %v3061_v61 }
  0x83   : > { %3066 = vmatprep.subr.bf16.mxu0 %v3710_v12 }
  0x85   : > { %2658 = vmatmul.mubr.f32.vlgmr.msra.gmra.mrb[0].mxu0 %v3908_v32  ;;  %v1233_v32 = vld [vmem:[%s4419_s3 + $0x38] sm:$0xff] }
  0x86   : > { %3068 = vmatpush3.bf16.msra.mxu0 %v3710_v12  ;;  %2660 = vmatprep.mubr.f32.mxu0 %v3924_v39 }
  0x87   : > { %3070 = vmatprep.subr.bf16.mxu0 %v3724_v18 }
  0x89   : > { %2661 = vmatmul.mubr.f32.gmra.mrb[2].mxu0 %v3930_v43 }
  0x8a   : > { %3072 = vmatpush3.bf16.msra.mxu0 %v3724_v18  ;;  %2663 = vmatprep.mubr.f32.mxu0 %v3946_v1 }
  0x8b   : > { %3074 = vmatprep.subr.bf16.mxu0 %v3753_v34 }
  0x8d   : > { %2664 = vmatmul.mubr.f32.gmra.mrb[4].mxu0 %v3952_v14 }
  0x8e   : > { %3076 = vmatpush3.bf16.msra.mxu0 %v3753_v34  ;;  %2666 = vmatprep.mubr.f32.mxu0 %v3967_v4 }
  0x8f   : > { %3078 = vmatprep.subr.bf16.mxu0 %v3793_v60 }
  0x91   : > { %2667 = vmatmul.mubr.f32.gmra.mrb[6].mxu0 %v3974_v19 }
  0x92   : > { %3080 = vmatpush3.bf16.msra.mxu0 %v3793_v60  ;;  %2701 = vmatprep.mubr.f32.mxu0 %v359_v40  ;;  %v1288_v40 = vand.u32 4294901760, %v1233_v32 }
  0x93   : > { %3082 = vmatprep.subr.bf16.mxu0 %v3815_v11 }
  0x96   : > { %3084 = vmatpush3.bf16.msra.mxu0 %v3815_v11 }
  0x97   : > { %3086 = vmatprep.subr.bf16.mxu0 %v3844_v48 }
  0x9a   : > { %3088 = vmatpush3.bf16.msra.mxu0 %v3844_v48 }
  0x9b   : > { %3090 = vmatprep.subr.bf16.mxu0 %v3855_v58 }
  0x9e   : > { %3092 = vmatpush3.bf16.msra.mxu0 %v3855_v58 }
  0x9f   : > { %3094 = vmatprep.subr.bf16.mxu0 %v3862_v16 }
  0xa2   : > { %3096 = vmatpush3.bf16.msra.mxu0 %v3862_v16 }
  0xa3   : > { %3098 = vmatprep.subr.bf16.mxu0 %v3868_v28 }
  0xa5   : > { %2702 = vmatmul.mubr.f32.vlgmr.msra.gmra.mrb[0].mxu0 %v369_v8 }
  0xa6   : > { %3100 = vmatpush3.bf16.msra.mxu0 %v3868_v28  ;;  %2704 = vmatprep.mubr.f32.mxu0 %v379_v53 }
  0xa7   : > { %3102 = vmatprep.subr.bf16.mxu0 %v3878_v37 }
  0xa9   : > { %2705 = vmatmul.mubr.f32.gmra.mrb[2].mxu0 %v389_v59 }
  0xaa   : > { %3104 = vmatpush3.bf16.msra.mxu0 %v3878_v37  ;;  %2707 = vmatprep.mubr.f32.mxu0 %v399_v6 }
  0xab   : > { %3106 = vmatprep.subr.bf16.mxu0 %v3884_v38 }
  0xad   : > { %2708 = vmatmul.mubr.f32.gmra.mrb[4].mxu0 %v409_v22 }
  0xae   : > { %3108 = vmatpush3.bf16.msra.mxu0 %v3884_v38  ;;  %2710 = vmatprep.mubr.f32.mxu0 %v419_v49 }
  0xaf   : > { %3110 = vmatprep.subr.bf16.mxu0 %v3890_v21 }
  0xb1   : > { %2711 = vmatmul.mubr.f32.gmra.mrb[6].mxu0 %v429_v56  ;;  %v1470_v56 = vsub.f32 %v1233_v32, %v1288_v40 }
  0xb2   : > { %3112 = vmatpush3.bf16.msra.mxu0 %v3890_v21  ;;  %2745 = vmatprep.mubr.f32.mxu0 %v3842_v45 }
  0xb3   : > { %3114 = vmatprep.subr.bf16.mxu0 %v3901_v25  ;;  %v1471_v24 = vand.u32 4294901760, %v1470_v56 }
  0xb5   : > { %v1472_v7 = vsub.f32 %v1470_v56, %v1471_v24 }
  0xb6   : > { %3116 = vmatpush3.bf16.msra.mxu0 %v3901_v25 }
  0xb7   : > { %3118 = vmatprep.subr.bf16.mxu0 %v3905_v26  ;;  %v1473_v47 = vand.u32 4294901760, %v1472_v7 }
  0xba   : > { %3120 = vmatpush3.bf16.msra.mxu0 %v3905_v26  ;;  %v1232_v26 = vld [vmem:[%s4419_s3 + $0x30] sm:$0xff] }
  0xbb   : > { %3122 = vmatprep.subr.bf16.mxu0 %v3910_v46 }
  0xbe   : > { %3124 = vmatpush3.bf16.msra.mxu0 %v3910_v46 }
  0xbf   : > { %3126 = vmatprep.subr.bf16.mxu0 %v3915_v41 }
  0xc2   : > { %3128 = vmatpush3.bf16.msra.mxu0 %v3915_v41 }
  0xc3   : > { %3130 = vmatprep.subr.bf16.mxu0 %v3710_v12 }
  0xc5   : > { %2746 = vmatmul.mubr.f32.vlgmr.msra.gmra.mrb[0].mxu0 %v3871_v29 }
  0xc6   : > { %3132 = vmatpush3.bf16.msra.mxu0 %v3710_v12  ;;  %2748 = vmatprep.mubr.f32.mxu0 %v3912_v35 }
  0xc7   : > { %3134 = vmatprep.subr.bf16.mxu0 %v3724_v18 }
  0xc9   : > { %2749 = vmatmul.mubr.f32.gmra.mrb[2].mxu0 %v3918_v3 }
  0xca   : > { %3136 = vmatpush3.bf16.msra.mxu0 %v3724_v18  ;;  %2751 = vmatprep.mubr.f32.mxu0 %v3937_v52  ;;  %v1226_v18 = vld [vmem:[%s4419_s3] sm:$0xff] }
  0xcb   : > { %3138 = vmatprep.subr.bf16.mxu0 %v3753_v34  ;;  %v1267_v62 = vand.u32 4294901760, %v1226_v18 }
  0xcd   : > { %2752 = vmatmul.mubr.f32.gmra.mrb[4].mxu0 %v3940_v57  ;;  %v1421_v23 = vsub.f32 %v1226_v18, %v1267_v62 }
  0xce   : > { %3140 = vmatpush3.bf16.msra.mxu0 %v3753_v34  ;;  %2754 = vmatprep.mubr.f32.mxu0 %v3959_v5  ;;  %v1227_v34 = vld [vmem:[%s4419_s3 + $0x8] sm:$0xff] }
  0xcf   : > { %3142 = vmatprep.subr.bf16.mxu0 %v3793_v60  ;;  %v1270_v2 = vand.u32 4294901760, %v1227_v34  ;;  %v1422_v41 = vand.u32 4294901760, %v1421_v23 }
  0xd1   : > { %2755 = vmatmul.mubr.f32.gmra.mrb[6].mxu0 %v3962_v30  ;;  %v4102_v9 = vpack.c.bf16 %v1270_v2, %v1267_v62  ;;  %v1428_v25 = vsub.f32 %v1227_v34, %v1270_v2  ;;  %v1423_v43 = vsub.f32 %v1421_v23, %v1422_v41 }
  0xd2   : > { %3144 = vmatpush3.bf16.msra.mxu0 %v3793_v60  ;;  %2789 = vmatprep.mubr.f32.mxu0 %v3842_v45  ;;  %v1276_v45 = vand.u32 4294901760, %v1229_v27 }
  0xd3   : > { %3146 = vmatprep.subr.bf16.mxu0 %v3815_v11  ;;  %3162 = vmatprep.subr.bf16.mxu1 %v4102_v9  ;;  %v1424_v59 = vand.u32 4294901760, %v1423_v43  ;;  %v4157_v18 = vpack.c.bf16 %v1428_v25, %v1421_v23 }
  0xd4   : > { %3164 = vmatpush3.bf16.msra.mxu1 %v4102_v9 }
  0xd6   : > { %3148 = vmatpush3.bf16.msra.mxu0 %v3815_v11  ;;  %v1228_v11 = vld [vmem:[%s4419_s3 + $0x10] sm:$0xff] }
  0xd7   : > { %3150 = vmatprep.subr.bf16.mxu0 %v3844_v48  ;;  %v1273_v44 = vand.u32 4294901760, %v1228_v11 }
  0xd9   : > { %v4116_v51 = vpack.c.bf16 %v1276_v45, %v1273_v44  ;;  %v1435_v53 = vsub.f32 %v1228_v11, %v1273_v44 }
  0xda   : > { %3152 = vmatpush3.bf16.msra.mxu0 %v3844_v48 }
  0xdb   : > { %3154 = vmatprep.subr.bf16.mxu0 %v3855_v58  ;;  %3166 = vmatprep.subr.bf16.mxu1 %v4116_v51  ;;  %v1436_v14 = vand.u32 4294901760, %v1435_v53 }
  0xdc   : > { %3168 = vmatpush3.bf16.msra.mxu1 %v4116_v51 }
  0xdd   : > { %v1437_v6 = vsub.f32 %v1435_v53, %v1436_v14 }
  0xde   : > { %3156 = vmatpush3.bf16.msra.mxu0 %v3855_v58  ;;  %v1230_v58 = vld [vmem:[%s4419_s3 + $0x20] sm:$0xff] }
  0xdf   : > { %3158 = vmatprep.subr.bf16.mxu0 %v3862_v16  ;;  %v1438_v55 = vand.u32 4294901760, %v1437_v6 }
  0xe2   : > { %3160 = vmatpush3.bf16.msra.mxu0 %v3862_v16  ;;  %v1231_v16 = vld [vmem:[%s4419_s3 + $0x28] sm:$0xff] }
  0xe3   : > { %v1282_v37 = vand.u32 4294901760, %v1231_v16 }
  0xe5   : > { %2790 = vmatmul.mubr.f32.vlgmr.msra.gmra.mrb[0].mxu0 %v3871_v29  ;;  %v1279_v29 = vand.u32 4294901760, %v1230_v58  ;;  %v1456_v22 = vsub.f32 %v1231_v16, %v1282_v37 }
  0xe6   : > { %2792 = vmatprep.mubr.f32.mxu0 %v3912_v35  ;;  %v1285_v35 = vand.u32 4294901760, %v1232_v26 }
  0xe7   : > { %v4130_v21 = vpack.c.bf16 %v1282_v37, %v1279_v29  ;;  %v1457_v19 = vand.u32 4294901760, %v1456_v22 }
  0xe8   : > { %v4144_v39 = vpack.c.bf16 %v1288_v40, %v1285_v35  ;;  %v1463_v54 = vsub.f32 %v1232_v26, %v1285_v35 }
  0xe9   : > { %2793 = vmatmul.mubr.f32.gmra.mrb[2].mxu0 %v3918_v3  ;;  %3170 = vmatprep.subr.bf16.mxu1 %v4130_v21  ;;  %v1429_v3 = vand.u32 4294901760, %v1428_v25  ;;  %v1458_v49 = vsub.f32 %v1456_v22, %v1457_v19 }
  0xea   : > { %2795 = vmatprep.mubr.f32.mxu0 %v3937_v52  ;;  %3172 = vmatpush3.bf16.msra.mxu1 %v4130_v21  ;;  %v1464_v20 = vand.u32 4294901760, %v1463_v54  ;;  %v4163_v2 = vpack.c.bf16 %v1470_v56, %v1463_v54 }
  0xeb   : > { %v1430_v52 = vsub.f32 %v1428_v25, %v1429_v3  ;;  %3174 = vmatprep.subr.bf16.mxu1 %v4144_v39  ;;  %v1459_v63 = vand.u32 4294901760, %v1458_v49  ;;  %v4165_v11 = vpack.c.bf16 %v1429_v3, %v1422_v41 }
  0xec   : > { %v1465_v13 = vsub.f32 %v1463_v54, %v1464_v20 }
  0xed   : > { %2796 = vmatmul.mubr.f32.gmra.mrb[4].mxu0 %v3940_v57  ;;  %v1442_v57 = vsub.f32 %v1229_v27, %v1276_v45  ;;  %v1431_v1 = vand.u32 4294901760, %v1430_v52  ;;  %v4171_v45 = vpack.c.bf16 %v1471_v24, %v1464_v20 }
  0xee   : > { %2798 = vmatprep.mubr.f32.mxu0 %v3959_v5  ;;  %3176 = vmatpush3.bf16.msra.mxu1 %v4144_v39  ;;  %v1466_v36 = vand.u32 4294901760, %v1465_v13 }
  0xef   : > { %v1443_v10 = vand.u32 4294901760, %v1442_v57  ;;  %v4148_v5 = vpack.c.bf16 %v1431_v1, %v1424_v59  ;;  %v4159_v34 = vpack.c.bf16 %v1442_v57, %v1435_v53 }
  0xf0   : > { %v4155_v61 = vpack.c.bf16 %v1473_v47, %v1466_v36 }
  0xf1   : > { %2799 = vmatmul.mubr.f32.gmra.mrb[6].mxu0 %v3962_v30  ;;  %v1444_v17 = vsub.f32 %v1442_v57, %v1443_v10  ;;  %3178 = vmatprep.subr.bf16.mxu1 %v4148_v5  ;;  %v1449_v30 = vsub.f32 %v1230_v58, %v1279_v29  ;;  %v4167_v27 = vpack.c.bf16 %v1443_v10, %v1436_v14  ;;  %v2288_v58 = vld [vmem:[%s4418_s2] ss:$0 sm:$0xff] }
  0xf3   : > { %v1445_v4 = vand.u32 4294901760, %v1444_v17  ;;  %v1450_v15 = vand.u32 4294901760, %v1449_v30  ;;  %v4161_v62 = vpack.c.bf16 %v1456_v22, %v1449_v30 }
  0xf5   : > { %v4151_v31 = vpack.c.bf16 %v1445_v4, %v1438_v55  ;;  %v1451_v42 = vsub.f32 %v1449_v30, %v1450_v15  ;;  %v4169_v44 = vpack.c.bf16 %v1457_v19, %v1450_v15 }
  0xf7   : > { %v1452_v50 = vand.u32 4294901760, %v1451_v42 }
  0xf9   : > { %v4153_v0 = vpack.c.bf16 %v1459_v63, %v1452_v50 }
 0x130   : > { %v4092_v12 = vpop.f32.mrb[0].mxu1 }
 0x131   : > { %v4100_v60 = vpop.f32.mrb[1].mxu1  ;;  %v374_v16 = vadd.f32 %v4092_v12, %v2288_v58 }
 0x132   : > { %v364_v29 = vadd.f32 %v2288_v58, %v4100_v60 }
 0x137   : > { %v4110_v33 = vpop.f32.mrb[2].mxu1 }
 0x138   : > { %v4113_v48 = vpop.f32.mrb[3].mxu1  ;;  %v394_v25 = vadd.f32 %v4110_v33, %v2288_v58 }
 0x139   : > { %v384_v35 = vadd.f32 %v2288_v58, %v4113_v48 }
 0x13b   : > { %v4124_v28 = vpop.f32.mrb[4].mxu1 }
 0x13c   : > { %v4127_v38 = vpop.f32.mrb[5].mxu1  ;;  %v414_v53 = vadd.f32 %v4124_v28, %v2288_v58 }
 0x13d   : > { %v404_v33 = vadd.f32 %v2288_v58, %v4127_v38 }
 0x13f   : > { %v4138_v46 = vpop.f32.mrb[6].mxu1 }
 0x140   : > { %v4141_v8 = vpop.f32.mrb[7].mxu1  ;;  %v434_v17 = vadd.f32 %v4138_v46, %v2288_v58 }
 0x141   : > { %v424_v4 = vadd.f32 %v2288_v58, %v4141_v8 }
 0x1b8   : > { %v2791_v37 = vpop.f32.mrb[0].mxu0 }
 0x1b9   : > { %v3258_v23 = vadd.f32 %v2791_v37, %v374_v16  ;;  %v1172_v26 = vpop.f32.mrb[1].mxu0 }
 0x1ba   : > { %v3260_v32 = vadd.f32 %v1172_v26, %v364_v29 }
 0x1bb   : > { %v1219_v40 = vmax.f32 %v3258_v23, 0.0 }
 0x1bc   : > { %v1218_v41 = vmax.f32 %v3260_v32, 0.0  ;;  %v2794_v3 = vpop.f32.mrb[2].mxu0 }
 0x1bd   : > { %v1246_v43 = vsel %vm1241_vm0, %v1219_v40, 0  ;;  %v3262_v52 = vadd.f32 %v2794_v3, %v394_v25  ;;  %v1184_v12 = vpop.f32.mrb[3].mxu0 }
 0x1be   : > { %v4182_v57 = vand.u32 4294901760, %v1246_v43  ;;  %v1243_v60 = vsel %vm1241_vm0, %v1218_v41, 0  ;;  %v3264_v59 = vadd.f32 %v1184_v12, %v384_v35 }
 0x1bf   : > { %v4186_v1 = vand.u32 4294901760, %v1243_v60  ;;  %v1221_v14 = vmax.f32 %v3262_v52, 0.0 }
 0x1c0   : > { %v4189_v48 = vsub.f32 %v1246_v43, %v4182_v57  ;;  %v1220_v10 = vmax.f32 %v3264_v59, 0.0  ;;  %v2797_v6 = vpop.f32.mrb[4].mxu0 }
 0x1c1   : > { %v4193_v28 = vsub.f32 %v1243_v60, %v4186_v1  ;;  %v1252_v30 = vsel %vm1241_vm0, %v1221_v14, 0  ;;  %v3266_v22 = vadd.f32 %v2797_v6, %v414_v53  ;;  %v1196_v55 = vpop.f32.mrb[5].mxu0 }
 0x1c2   : > { %v1351_v38 = vand.u32 4294901760, %v4189_v48  ;;  %v4198_v15 = vand.u32 4294901760, %v1252_v30  ;;  %v1249_v19 = vsel %vm1241_vm0, %v1220_v10, 0  ;;  %v3268_v42 = vadd.f32 %v1196_v55, %v404_v33 }
 0x1c3   : > { %v4201_v49 = vand.u32 4294901760, %v1249_v19  ;;  %v1223_v54 = vmax.f32 %v3266_v22, 0.0  ;;  %v1341_v46 = vand.u32 4294901760, %v4193_v28 }
 0x1c4   : > { %v1352_v56 = vsub.f32 %v4189_v48, %v1351_v38  ;;  %v4208_v50 = vsub.f32 %v1252_v30, %v4198_v15  ;;  %v1222_v8 = vmax.f32 %v3268_v42, 0.0  ;;  %v2800_v63 = vpop.f32.mrb[6].mxu0 }
 0x1c5   : > { %v4211_v20 = vsub.f32 %v1249_v19, %v4201_v49  ;;  %v1258_v24 = vsel %vm1241_vm0, %v1223_v54, 0  ;;  %v3270_v13 = vadd.f32 %v2800_v63, %v434_v17  ;;  %v1208_v7 = vpop.f32.mrb[7].mxu0  ;;  %v1342_v36 = vsub.f32 %v4193_v28, %v1341_v46 }
 0x1c6   : > { %v4217_v47 = vand.u32 4294901760, %v1258_v24  ;;  %v1255_v58 = vsel %vm1241_vm0, %v1222_v8, 0  ;;  %v3272_v16 = vadd.f32 %v1208_v7, %v424_v4  ;;  %v1353_v26 = vand.u32 4294901760, %v1352_v56 }
 0x1c7   : > { %v4220_v29 = vand.u32 4294901760, %v1255_v58  ;;  %v1225_v37 = vmax.f32 %v3270_v13, 0.0  ;;  %v1343_v23 = vand.u32 4294901760, %v1342_v36  ;;  %v1361_v25 = vand.u32 4294901760, %v4211_v20 }
 0x1c8   : > { %v4224_v32 = vsub.f32 %v1258_v24, %v4217_v47  ;;  %v1224_v35 = vmax.f32 %v3272_v16, 0.0  ;;  %v1371_v40 = vand.u32 4294901760, %v4208_v50 }
 0x1c9   : > { %v4228_v41 = vsub.f32 %v1255_v58, %v4220_v29  ;;  %v1264_v3 = vsel %vm1241_vm0, %v1225_v37, 0  ;;  %2817 = vmatprep.mubr.f32.mxu1 %v1343_v23  ;;  %v1362_v43 = vsub.f32 %v4211_v20, %v1361_v25 }
 0x1ca   : > { %v4234_v52 = vand.u32 4294901760, %v1264_v3  ;;  %v1261_v53 = vsel %vm1241_vm0, %v1224_v35, 0  ;;  %2818 = vmatmul.mubr.f32.vlgmr.msra.gmra.mrb[8].mxu1 %v1353_v26  ;;  %v1372_v12 = vsub.f32 %v4208_v50, %v1371_v40  ;;  %v1391_v60 = vand.u32 4294901760, %v4224_v32 }
 0x1cb   : > { %v4241_v59 = vand.u32 4294901760, %v1261_v53  ;;  %3180 = vmatpush3.bf16.msra.mxu1 %v4148_v5  ;;  %v1363_v33 = vand.u32 4294901760, %v1362_v43  ;;  %v1381_v14 = vand.u32 4294901760, %v4228_v41 }
 0x1cc   : > { %v4246_v10 = vsub.f32 %v1264_v3, %v4234_v52  ;;  %3182 = vmatprep.subr.bf16.mxu1 %v4151_v31  ;;  %v1373_v6 = vand.u32 4294901760, %v1372_v12  ;;  %v1392_v17 = vsub.f32 %v4224_v32, %v1391_v60 }
 0x1cd   : > { %v4253_v30 = vsub.f32 %v1261_v53, %v4241_v59  ;;  %2820 = vmatprep.mubr.f32.mxu1 %v1363_v33  ;;  %v1382_v5 = vsub.f32 %v4228_v41, %v1381_v14 }
 0x1ce   : > { %2821 = vmatmul.mubr.f32.gmra.mrb[10].mxu1 %v1373_v6  ;;  %v1411_v22 = vand.u32 4294901760, %v4246_v10  ;;  %v1393_v19 = vand.u32 4294901760, %v1392_v17 }
 0x1cf   : > { %3184 = vmatpush3.bf16.msra.mxu1 %v4151_v31  ;;  %v1383_v55 = vand.u32 4294901760, %v1382_v5  ;;  %v1401_v4 = vand.u32 4294901760, %v4253_v30 }
 0x1d0   : > { %3186 = vmatprep.subr.bf16.mxu1 %v4153_v0  ;;  %v1412_v42 = vsub.f32 %v4246_v10, %v1411_v22 }
 0x1d1   : > { %2823 = vmatprep.mubr.f32.mxu1 %v1383_v55  ;;  %v1402_v54 = vsub.f32 %v4253_v30, %v1401_v4  ;;  %v3435_v55 = vld [vmem:[%s3686_s28 + $0x8] sm:$0xff] }
 0x1d2   : > { %2824 = vmatmul.mubr.f32.gmra.mrb[12].mxu1 %v1393_v19  ;;  %v1413_v8 = vand.u32 4294901760, %v1412_v42 }
 0x1d3   : > { %3188 = vmatpush3.bf16.msra.mxu1 %v4153_v0  ;;  %v1403_v56 = vand.u32 4294901760, %v1402_v54 }
 0x1d4   : > { %3190 = vmatprep.subr.bf16.mxu1 %v4155_v61 }
 0x1d5   : > { %2826 = vmatprep.mubr.f32.mxu1 %v1403_v56 }
 0x1d6   : > { %2827 = vmatmul.mubr.f32.gmra.mrb[14].mxu1 %v1413_v8 }
 0x1d7   : > { %3192 = vmatpush3.bf16.msra.mxu1 %v4155_v61  ;;  %2845 = vmatprep.mubr.f32.mxu1 %v4186_v1 }
 0x1d8   : > { %3194 = vmatprep.subr.bf16.mxu1 %v4157_v18 }
 0x1da   : > { %2846 = vmatmul.mubr.f32.vlgmr.msra.gmra.mrb[8].mxu1 %v4182_v57 }
 0x1db   : > { %3196 = vmatpush3.bf16.msra.mxu1 %v4157_v18  ;;  %2848 = vmatprep.mubr.f32.mxu1 %v4201_v49 }
 0x1dc   : > { %3198 = vmatprep.subr.bf16.mxu1 %v4159_v34 }
 0x1de   : > { %2849 = vmatmul.mubr.f32.gmra.mrb[10].mxu1 %v4198_v15 }
 0x1df   : > { %3200 = vmatpush3.bf16.msra.mxu1 %v4159_v34  ;;  %2851 = vmatprep.mubr.f32.mxu1 %v4220_v29 }
 0x1e0   : > { %3202 = vmatprep.subr.bf16.mxu1 %v4161_v62 }
 0x1e2   : > { %2852 = vmatmul.mubr.f32.gmra.mrb[12].mxu1 %v4217_v47 }
 0x1e3   : > { %3204 = vmatpush3.bf16.msra.mxu1 %v4161_v62  ;;  %2854 = vmatprep.mubr.f32.mxu1 %v4241_v59 }
 0x1e4   : > { %3206 = vmatprep.subr.bf16.mxu1 %v4163_v2 }
 0x1e6   : > { %2855 = vmatmul.mubr.f32.gmra.mrb[14].mxu1 %v4234_v52 }
 0x1e7   : > { %3208 = vmatpush3.bf16.msra.mxu1 %v4163_v2  ;;  %2873 = vmatprep.mubr.f32.mxu1 %v4193_v28 }
 0x1e8   : > { %3210 = vmatprep.subr.bf16.mxu1 %v4102_v9 }
 0x1ea   : > { %2874 = vmatmul.mubr.f32.vlgmr.msra.gmra.mrb[8].mxu1 %v4189_v48 }
 0x1eb   : > { %3212 = vmatpush3.bf16.msra.mxu1 %v4102_v9  ;;  %2876 = vmatprep.mubr.f32.mxu1 %v4211_v20 }
 0x1ec   : > { %3214 = vmatprep.subr.bf16.mxu1 %v4116_v51 }
 0x1ee   : > { %2877 = vmatmul.mubr.f32.gmra.mrb[10].mxu1 %v4208_v50 }
 0x1ef   : > { %3216 = vmatpush3.bf16.msra.mxu1 %v4116_v51  ;;  %2879 = vmatprep.mubr.f32.mxu1 %v4228_v41 }
 0x1f0   : > { %3218 = vmatprep.subr.bf16.mxu1 %v4130_v21 }
 0x1f2   : > { %2880 = vmatmul.mubr.f32.gmra.mrb[12].mxu1 %v4224_v32 }
 0x1f3   : > { %3220 = vmatpush3.bf16.msra.mxu1 %v4130_v21  ;;  %2882 = vmatprep.mubr.f32.mxu1 %v4253_v30 }
 0x1f4   : > { %3222 = vmatprep.subr.bf16.mxu1 %v4144_v39 }
 0x1f6   : > { %2883 = vmatmul.mubr.f32.gmra.mrb[14].mxu1 %v4246_v10 }
 0x1f7   : > { %3224 = vmatpush3.bf16.msra.mxu1 %v4144_v39  ;;  %2901 = vmatprep.mubr.f32.mxu1 %v1341_v46 }
 0x1f8   : > { %3226 = vmatprep.subr.bf16.mxu1 %v4165_v11 }
 0x1fa   : > { %2902 = vmatmul.mubr.f32.vlgmr.msra.gmra.mrb[8].mxu1 %v1351_v38 }
 0x1fb   : > { %3228 = vmatpush3.bf16.msra.mxu1 %v4165_v11  ;;  %2904 = vmatprep.mubr.f32.mxu1 %v1361_v25 }
 0x1fc   : > { %3230 = vmatprep.subr.bf16.mxu1 %v4167_v27 }
 0x1fe   : > { %2905 = vmatmul.mubr.f32.gmra.mrb[10].mxu1 %v1371_v40 }
 0x1ff   : > { %3232 = vmatpush3.bf16.msra.mxu1 %v4167_v27  ;;  %2907 = vmatprep.mubr.f32.mxu1 %v1381_v14 }
 0x200   : > { %3234 = vmatprep.subr.bf16.mxu1 %v4169_v44 }
 0x202   : > { %2908 = vmatmul.mubr.f32.gmra.mrb[12].mxu1 %v1391_v60 }
 0x203   : > { %3236 = vmatpush3.bf16.msra.mxu1 %v4169_v44  ;;  %2910 = vmatprep.mubr.f32.mxu1 %v1401_v4 }
 0x204   : > { %3238 = vmatprep.subr.bf16.mxu1 %v4171_v45 }
 0x206   : > { %2911 = vmatmul.mubr.f32.gmra.mrb[14].mxu1 %v1411_v22 }
 0x207   : > { %3240 = vmatpush3.bf16.msra.mxu1 %v4171_v45  ;;  %2929 = vmatprep.mubr.f32.mxu1 %v4186_v1 }
 0x208   : > { %3242 = vmatprep.subr.bf16.mxu1 %v4102_v9 }
 0x20a   : > { %2930 = vmatmul.mubr.f32.vlgmr.msra.gmra.mrb[8].mxu1 %v4182_v57 }
 0x20b   : > { %3244 = vmatpush3.bf16.msra.mxu1 %v4102_v9  ;;  %2932 = vmatprep.mubr.f32.mxu1 %v4201_v49  ;;  %v2289_v9 = vld [vmem:[%s4420_s4] ss:$0 sm:$0xff] }
 0x20c   : > { %3246 = vmatprep.subr.bf16.mxu1 %v4116_v51 }
 0x20e   : > { %2933 = vmatmul.mubr.f32.gmra.mrb[10].mxu1 %v4198_v15 }
 0x20f   : > { %3248 = vmatpush3.bf16.msra.mxu1 %v4116_v51  ;;  %2935 = vmatprep.mubr.f32.mxu1 %v4220_v29 }
 0x210   : > { %3250 = vmatprep.subr.bf16.mxu1 %v4130_v21 }
 0x212   : > { %2936 = vmatmul.mubr.f32.gmra.mrb[12].mxu1 %v4217_v47 }
 0x213   : > { %3252 = vmatpush3.bf16.msra.mxu1 %v4130_v21  ;;  %2938 = vmatprep.mubr.f32.mxu1 %v4241_v59 }
 0x214   : > { %3254 = vmatprep.subr.bf16.mxu1 %v4144_v39 }
 0x216   : > { %2939 = vmatmul.mubr.f32.gmra.mrb[14].mxu1 %v4234_v52 }
 0x217   : > { %3256 = vmatpush3.bf16.msra.mxu1 %v4144_v39  ;;  %2957 = vmatprep.mubr.f32.mxu1 %v4186_v1 }
 0x21a   : > { %2958 = vmatmul.mubr.f32.vlgmr.msra.gmra.mrb[8].mxu1 %v4182_v57 }
 0x21b   : > { %2960 = vmatprep.mubr.f32.mxu1 %v4201_v49 }
 0x21e   : > { %2961 = vmatmul.mubr.f32.gmra.mrb[10].mxu1 %v4198_v15 }
 0x21f   : > { %2963 = vmatprep.mubr.f32.mxu1 %v4220_v29 }
 0x222   : > { %2964 = vmatmul.mubr.f32.gmra.mrb[12].mxu1 %v4217_v47 }
 0x223   : > { %2966 = vmatprep.mubr.f32.mxu1 %v4241_v59 }
 0x226   : > { %2967 = vmatmul.mubr.f32.gmra.mrb[14].mxu1 %v4234_v52 }
 0x2ed   : > { %v2959_v51 = vpop.f32.mrb[8].mxu1 }
 0x2ee   : > { %v3273_v21 = vadd.f32 %v2959_v51, %v2289_v9  ;;  %v2058_v39 = vpop.f32.mrb[9].mxu1  ;;  %v3436_v51 = vld [vmem:[%s3686_s28 + $0x18] sm:$0xff] }
 0x2ef   : > { %v3274_v0 = vadd.f32 %v2289_v9, %v2058_v39  ;;  %v3437_v39 = vld [vmem:[%s3686_s28] sm:$0xff] }
 0x2f0   : > { %2106 = vmax.xlane.f32.xlu0 %v3273_v21 }
 0x2f1   : > { %v2962_v31 = vpop.f32.mrb[10].mxu1 }
 0x2f2   : > { %v3275_v61 = vadd.f32 %v2962_v31, %v2289_v9  ;;  %v2070_v18 = vpop.f32.mrb[11].mxu1 }
 0x2f3   : > { %v3276_v62 = vadd.f32 %v2289_v9, %v2070_v18 }
 0x2f4   : > { %2110 = vmax.xlane.f32.xlu1 %v3275_v61  ;;  %2104 = vmax.xlane.f32.xlu0 %v3274_v0 }
 0x2f5   : > { %v2965_v34 = vpop.f32.mrb[12].mxu1 }
 0x2f6   : > { %v2082_v2 = vpop.f32.mrb[13].mxu1  ;;  %v3277_v44 = vadd.f32 %v2965_v34, %v2289_v9  ;;  %v3438_v34 = vld [vmem:[%s3686_s28 + $0x10] sm:$0xff] }
 0x2f7   : > { %v3278_v11 = vadd.f32 %v2289_v9, %v2082_v2 }
 0x2f8   : > { %2108 = vmax.xlane.f32.xlu1 %v3276_v62 }
 0x2f9   : > { %v2968_v27 = vpop.f32.mrb[14].mxu1  ;;  %2112 = vmax.xlane.f32.xlu0 %v3278_v11 }
 0x2fa   : > { %v2094_v45 = vpop.f32.mrb[15].mxu1  ;;  %v3279_v1 = vadd.f32 %v2968_v27, %v2289_v9 }
 0x2fb   : > { %v3280_v57 = vadd.f32 %v2289_v9, %v2094_v45 }
 0x2fc   : > { %2114 = vmax.xlane.f32.xlu1 %v3277_v44 }
 0x2fd   : > { %2116 = vmax.xlane.f32.xlu0 %v3280_v57 }
 0x300   : > { %2118 = vmax.xlane.f32.xlu1 %v3279_v1 }
 0x37d   : > { %v2107_v48 = vpop.xlane.xlu0 %2106 }
 0x37e   : > { %v2121_v28 = vsub.f32 %v3273_v21, %v2107_v48 }
 0x380   : > { %v2130_v38 = vmul.f32 1.442695, %v2121_v28 }
 0x381   : > { %v2111_v15 = vpop.xlane.xlu1 %2110  ;;  %v2105_v49 = vpop.xlane.xlu0 %2104 }
 0x382   : > { %3403 = vpow2.f32 %v2130_v38  ;;  %v2123_v46 = vsub.f32 %v3275_v61, %v2111_v15  ;;  %v2120_v50 = vsub.f32 %v3274_v0, %v2105_v49  ;;  %v3441_v49 = vld [vmem:[%s3686_s28 + $0x38] sm:$0xff] }
 0x384   : > { %v2134_v63 = vmul.f32 1.442695, %v2123_v46  ;;  %v2128_v20 = vmul.f32 1.442695, %v2120_v50  ;;  %v3442_v50 = vld [vmem:[%s3686_s28 + $0x30] sm:$0xff] }
 0x385   : > { %v2109_v24 = vpop.xlane.xlu1 %2108 }
 0x386   : > { %3405 = vpow2.f32 %v2134_v63  ;;  %v2122_v13 = vsub.f32 %v3276_v62, %v2109_v24  ;;  %v2113_v7 = vpop.xlane.xlu0 %2112 }
 0x387   : > { %3407 = vpow2.f32 %v2128_v20  ;;  %v2124_v36 = vsub.f32 %v3278_v11, %v2113_v7 }
 0x388   : > { %v2132_v47 = vmul.f32 1.442695, %v2122_v13 }
 0x389   : > { %v2115_v58 = vpop.xlane.xlu1 %2114  ;;  %v2136_v37 = vmul.f32 1.442695, %v2124_v36 }
 0x38a   : > { %3409 = vpow2.f32 %v2132_v47  ;;  %v2125_v16 = vsub.f32 %v3277_v44, %v2115_v58  ;;  %v2117_v29 = vpop.xlane.xlu0 %2116  ;;  %v3439_v44 = vld [vmem:[%s3686_s28 + $0x28] sm:$0xff] }
 0x38b   : > { %v2126_v23 = vsub.f32 %v3280_v57, %v2117_v29 }
 0x38c   : > { %v3404_v25 = vpop.eup %3403  ;;  %v2138_v26 = vmul.f32 1.442695, %v2125_v16 }
 0x38d   : > { %2146 = vadd.xlane.f32.xlu1 %v3404_v25  ;;  %v2119_v32 = vpop.xlane.xlu1 %2118  ;;  %v2140_v40 = vmul.f32 1.442695, %v2126_v23 }
 0x38e   : > { %3411 = vpow2.f32 %v2138_v26  ;;  %v2127_v35 = vsub.f32 %v3279_v1, %v2119_v32  ;;  %v3440_v1 = vld [vmem:[%s3686_s28 + $0x20] sm:$0xff] }
 0x38f   : > { %3413 = vpow2.f32 %v2136_v37 }
 0x390   : > { %v3406_v41 = vpop.eup %3405  ;;  %v2142_v3 = vmul.f32 1.442695, %v2127_v35 }
 0x391   : > { %v3408_v43 = vpop.eup %3407  ;;  %2150 = vadd.xlane.f32.xlu1 %v3406_v41 }
 0x392   : > { %3415 = vpow2.f32 %v2142_v3  ;;  %2144 = vadd.xlane.f32.xlu0 %v3408_v43 }
 0x393   : > { %3417 = vpow2.f32 %v2140_v40 }
 0x394   : > { %v3410_v52 = vpop.eup %3409 }
 0x396   : > { %2148 = vadd.xlane.f32.xlu0 %v3410_v52 }
 0x398   : > { %v3412_v53 = vpop.eup %3411 }
 0x399   : > { %v3414_v12 = vpop.eup %3413  ;;  %2154 = vadd.xlane.f32.xlu1 %v3412_v53 }
 0x39a   : > { %2152 = vadd.xlane.f32.xlu0 %v3414_v12 }
 0x39c   : > { %v3416_v60 = vpop.eup %3415 }
 0x39d   : > { %v3418_v59 = vpop.eup %3417  ;;  %2158 = vadd.xlane.f32.xlu1 %v3416_v60 }
 0x39e   : > { %2156 = vadd.xlane.f32.xlu0 %v3418_v59 }
 0x41a   : > { %v2147_v33 = vpop.xlane.xlu1 %2146 }
 0x41b   : > { %3419 = vrcp.f32 %v2147_v33 }
 0x41e   : > { %v2151_v14 = vpop.xlane.xlu1 %2150 }
 0x41f   : > { %3421 = vrcp.f32 %v2151_v14  ;;  %v2145_v10 = vpop.xlane.xlu0 %2144 }
 0x420   : > { %3423 = vrcp.f32 %v2145_v10 }
 0x423   : > { %v2149_v6 = vpop.xlane.xlu0 %2148 }
 0x424   : > { %3425 = vrcp.f32 %v2149_v6 }
 0x425   : > { %v3420_v17 = vpop.eup %3419 }
 0x426   : > { %v2163_v30 = vmul.f32 %v3420_v17, %v3404_v25  ;;  %v2155_v5 = vpop.xlane.xlu1 %2154 }
 0x427   : > { %3427 = vrcp.f32 %v2155_v5  ;;  %v2153_v22 = vpop.xlane.xlu0 %2152 }
 0x428   : > { %v2177_v4 = vmul.f32 %v3435_v55, %v2163_v30  ;;  %3429 = vrcp.f32 %v2153_v22 }
 0x429   : > { %v3422_v19 = vpop.eup %3421 }
 0x42a   : > { %v3424_v42 = vpop.eup %3423  ;;  %2185 = vst [vmem:[%s4349_s12 + $0x8] sm:$0xff] %v2177_v4  ;;  %v2167_v54 = vmul.f32 %v3422_v19, %v3406_v41  ;;  %v2159_v56 = vpop.xlane.xlu1 %2158 }
 0x42b   : > { %v2161_v8 = vmul.f32 %v3424_v42, %v3408_v43  ;;  %3431 = vrcp.f32 %v2159_v56  ;;  %v2157_v9 = vpop.xlane.xlu0 %2156 }
 0x42c   : > { %v2179_v21 = vmul.f32 %v3436_v51, %v2167_v54  ;;  %3433 = vrcp.f32 %v2157_v9 }
 0x42d   : > { %v2176_v31 = vmul.f32 %v3437_v39, %v2161_v8 }
 0x42e   : > { %v3426_v0 = vpop.eup %3425  ;;  %2187 = vst [vmem:[%s4349_s12 + $0x18] sm:$0xff] %v2179_v21 }
 0x42f   : > { %2184 = vst [vmem:[%s4349_s12] sm:$0xff] %v2176_v31  ;;  %v2165_v61 = vmul.f32 %v3426_v0, %v3410_v52 }
 0x431   : > { %v3428_v18 = vpop.eup %3427  ;;  %v2178_v62 = vmul.f32 %v3438_v34, %v2165_v61 }
 0x432   : > { %v3430_v2 = vpop.eup %3429  ;;  %v2171_v11 = vmul.f32 %v3428_v18, %v3412_v53 }
 0x433   : > { %2186 = vst [vmem:[%s4349_s12 + $0x10] sm:$0xff] %v2178_v62  ;;  %v2169_v27 = vmul.f32 %v3430_v2, %v3414_v12 }
 0x434   : > { %v2181_v45 = vmul.f32 %v3439_v44, %v2171_v11 }
 0x435   : > { %v3432_v57 = vpop.eup %3431  ;;  %v2180_v48 = vmul.f32 %v3440_v1, %v2169_v27 }
 0x436   : > { %v3434_v28 = vpop.eup %3433  ;;  %2189 = vst [vmem:[%s4349_s12 + $0x28] sm:$0xff] %v2181_v45  ;;  %v2175_v38 = vmul.f32 %v3432_v57, %v3416_v60 }
 0x437   : > { %2188 = vst [vmem:[%s4349_s12 + $0x20] sm:$0xff] %v2180_v48  ;;  %v2173_v15 = vmul.f32 %v3434_v28, %v3418_v59 }
 0x438   : > { %v2183_v46 = vmul.f32 %v3441_v49, %v2175_v38 }
 0x439   : > { %v2182_v63 = vmul.f32 %v3442_v50, %v2173_v15 }
 0x43a   : > { %2191 = vst [vmem:[%s4349_s12 + $0x38] sm:$0xff] %v2183_v46 }
 0x43b   : > { %2190 = vst [vmem:[%s4349_s12 + $0x30] sm:$0xff] %v2182_v63 }
 0x43c   : > { %3486 = shalt.err (!%p3483_p1)
}
 0x43d   : > { %s3487_s28 = scalar_lea.hbm %s4368_s8, 1024  ;;  %s3491_s17 = scalar_lea.hbm %s4421_s5, 4096 }
 0x43e   : > { %p3488_p3 = scmp.ne.s32.totalorder %s4368_s8, %s3487_s28  ;;  %p3492_p0 = scmp.lt.u32.totalorder %s4368_s8, %s4421_s5 }
 0x43f   : > { %p3493_p2 = scmp.lt.u32.totalorder %s3491_s17, %s3487_s28  ;;  %p3495_p6 = scmp.lt.u32.totalorder %s3487_s28, %s4368_s8 }
 0x440   : > { %p3489_p4 = pnand %p3488_p3, %p4428_p10 }
 0x441   : > { %p3494_p7 = por %p3493_p2, %p3492_p0 }
 0x442   : > { %p3490_p5 = pneg %p3489_p4 }
 0x443   : > { %p3496_p11 = por %p3495_p6, %p3494_p7 }
 0x445   : > { %p3497_p12 = pnand %p3496_p11, %p3490_p5 }
 0x447   : > { %3500 = shalt.err (!%p3497_p12)
}
 0x448   : > { %s3545_s25 = smov 128   ;;  %s3546_s15 = smov 8  }
 0x449   : > { %3355 = dma.vmem_to_hbm [thread:$0]  (%p4428_p10), %s4370_s14, 1024, %s4368_s8, %s2193_s22, %s3545_s25, %s3545_s25, %s3546_s15  }
 0x44a PF: > { %p3366_p8 = scmp.ge.s32.totalorder %s3539_s21, 2  ;;  %s2221_s16 = sand.u32 1, %s3527_s18  }
 0x44b   : > { %p4429_p9 = scmp.ne.s32.totalorder %s4426_s6, 0  ;;  %s2222_s7 = scalar_lea.sflag [#allocation4], %s2221_s16 }
 0x44d   : > { %p3362_p13 = pnand %p3366_p8, %p4429_p9 }
 0x44f   : > { %3522 = dma.done.wait (!%p3362_p13), %s2222_s7, 1024  }
 0x450   : > { %3524 = vsyncadd (!%p3362_p13), %s2222_s7, 4294966272  ;;  %p18_p1 = scmp.ge.s32.totalorder %s3602_s24, 6   ;;  %s4430_s18 = smov %s3531_s19 }
 0x451   : > { %s4431_s19 = smov %s3535_s20  ;;  %s4432_s20 = smov %s3614_s27 }
 0x452   : > { %s4433_s21 = smov %s3602_s24  ;;  %20 = sbr.rel (!%p18_p1) target bundleno = 5 (0x5), region = 85 }
 0x459   :  { %2227 = vsyncpa [#allocation3], 1 }
 0x45a   :  { %2229 = vsyncpa [#allocation3 + $0x1], 1 }
 0x45b   :  { %2230 = vsyncpa [#allocation4], 1 }
 0x45c   :  { %2232 = vsyncpa [#allocation4 + $0x1], 1 }

</bundles_post_ra>
